<compile_context>
chip_gen: v6e
topology: v6e:2x2x1
jax: 0.10.0
libtpu: 0.0.40
codegen_flags: <defaults>
</compile_context>

<pallas_src>
import jax
import jax.numpy as jnp
from jax.experimental import pallas as pl
from jax.experimental.pallas import tpu as pltpu


# ----------------------------- Pallas kernel ------------------------------ #
def _two_tower_kernel(
    xq_ref, xc_ref,                        # pooled activations, transposed: (Dp, TB)
    qw1_ref, qb1_ref, qw2_ref, qb2_ref,    # query tower:  (H1p,Dp) (H1p,1) (H2p,H1p) (H2p,1)
    cw1_ref, cb1_ref, cw2_ref, cb2_ref,    # candidate tower
    y_ref, mask_ref,                       # labels / valid-mask, (1, 1, TB) f32
    logits_ref,                            # out: (1, 1, TB) f32 (lane-dense)
    loss_part_ref,                         # out: (1, 1) f32 in SMEM (per-tile partial sum)
):
    f32 = jnp.float32
    cdt = xq_ref.dtype   # compute dtype (bf16 by default)

    def tower(x, w1_ref, b1_ref, w2_ref, b2_ref):
        # Layer 1: Linear + ReLU (f32 accumulation / bias / activation).
        h = jnp.dot(w1_ref[...], x, preferred_element_type=f32) + b1_ref[...]
        h = jnp.maximum(h, 0.0).astype(cdt)
        # Layer 2: Linear + ReLU.
        e = jnp.dot(w2_ref[...], h, preferred_element_type=f32) + b2_ref[...]
        return jnp.maximum(e, 0.0)                       # (H2p, TB) f32

    q_emb = tower(xq_ref[...], qw1_ref, qb1_ref, qw2_ref, qb2_ref)
    c_emb = tower(xc_ref[...], cw1_ref, cb1_ref, cw2_ref, cb2_ref)

    # Interaction: per-sample dot product. Batch is on lanes, features on
    # sublanes, so the reduction lands directly as a lane-dense (1, TB) row.
    logits = jnp.sum(q_emb * c_emb, axis=0, keepdims=True)   # (1, TB) f32
    logits_ref[0] = logits

    # BCEWithLogitsLoss (numerically stable), masked partial sum for this tile:
    #   max(x, 0) - x*y + log1p(exp(-|x|))
    y = y_ref[0]
    m = mask_ref[0]
    per_elem = (
        jnp.maximum(logits, 0.0)
        - logits * y
        + jnp.log1p(jnp.exp(-jnp.abs(logits)))
    )
    loss_part_ref[0, 0] = jnp.sum(per_elem * m)


# ------------------------------- wrapper ----------------------------------- #
def two_tower_train_task_forward(
    q_pooled, c_pooled,
    qw1, qb1, qw2, qb2,
    cw1, cb1, cw2, cb2,
    labels,
    *,
    batch_tile=128,                 # 128 is portable; 256 is a good choice on v6e/v7x
    compute_dtype=jnp.bfloat16,     # weights/activations; accumulation & loss stay f32
):
    """TwoTowerTrainTask hot path (MLP towers + interaction + BCE) in one Pallas call."""
    f32 = jnp.float32
    B, D = q_pooled.shape
    H1 = qw1.shape[1]
    H2 = qw2.shape[1]

    rup = lambda n, m: ((n + m - 1) // m) * m
    Dp, H1p, H2p = rup(D, 128), rup(H1, 128), rup(H2, 128)
    TB = batch_tile
    B_pad = rup(B, TB)
    n_tiles = B_pad // TB

    def pad2(x, rows, cols):
        return jnp.pad(x, ((0, rows - x.shape[0]), (0, cols - x.shape[1])))

    # Activations: pad and transpose so batch maps to lanes. Zero padding is exact
    # for the feature axis; padded batch columns are masked out of the loss below.
    xq_t = pad2(q_pooled.astype(f32), B_pad, Dp).T.astype(compute_dtype)   # (Dp, B_pad)
    xc_t = pad2(c_pooled.astype(f32), B_pad, Dp).T.astype(compute_dtype)

    # Weights transposed to (out, in) = PyTorch Linear layout; biases as columns.
    qw1_k = pad2(qw1.astype(f32), Dp, H1p).T.astype(compute_dtype)   # (H1p, Dp)
    qb1_k = pad2(qb1.astype(f32), 1, H1p).T                          # (H1p, 1) f32
    qw2_k = pad2(qw2.astype(f32), H1p, H2p).T.astype(compute_dtype)  # (H2p, H1p)
    qb2_k = pad2(qb2.astype(f32), 1, H2p).T                          # (H2p, 1) f32
    cw1_k = pad2(cw1.astype(f32), Dp, H1p).T.astype(compute_dtype)
    cb1_k = pad2(cb1.astype(f32), 1, H1p).T
    cw2_k = pad2(cw2.astype(f32), H1p, H2p).T.astype(compute_dtype)
    cb2_k = pad2(cb2.astype(f32), 1, H2p).T

    labels_f = labels.astype(f32)
    y_tiles = jnp.zeros((B_pad,), f32).at[:B].set(labels_f).reshape(n_tiles, 1, TB)
    m_tiles = jnp.zeros((B_pad,), f32).at[:B].set(1.0).reshape(n_tiles, 1, TB)

    const_map = lambda i: (0, 0)
    act_map = lambda i: (0, i)
    row_map = lambda i: (i, 0, 0)

    in_specs = [
        pl.BlockSpec((Dp, TB), act_map),       # xq_t
        pl.BlockSpec((Dp, TB), act_map),       # xc_t
        pl.BlockSpec((H1p, Dp), const_map),    # qw1 (VMEM-resident across grid)
        pl.BlockSpec((H1p, 1), const_map),     # qb1
        pl.BlockSpec((H2p, H1p), const_map),   # qw2
        pl.BlockSpec((H2p, 1), const_map),     # qb2
        pl.BlockSpec((H1p, Dp), const_map),    # cw1
        pl.BlockSpec((H1p, 1), const_map),     # cb1
        pl.BlockSpec((H2p, H1p), const_map),   # cw2
        pl.BlockSpec((H2p, 1), const_map),     # cb2
        pl.BlockSpec((1, 1, TB), row_map),     # labels
        pl.BlockSpec((1, 1, TB), row_map),     # valid mask
    ]
    out_specs = (
        pl.BlockSpec((1, 1, TB), row_map),     # logits, lane-dense
        pl.BlockSpec((1, 1), lambda i: (i, 0),
                     memory_space=pltpu.MemorySpace.SMEM),   # per-tile loss partial sum
    )
    out_shape = (
        jax.ShapeDtypeStruct((n_tiles, 1, TB), f32),
        jax.ShapeDtypeStruct((n_tiles, 1), f32),
    )

    itemsize = jnp.dtype(compute_dtype).itemsize
    cost = pl.CostEstimate(
        flops=2 * B_pad * (Dp * H1p + H1p * H2p) * 2 + 3 * B_pad * H2p,
        transcendentals=2 * B_pad,
        bytes_accessed=(
            2 * B_pad * Dp * itemsize                       # activations
            + 2 * (H1p * Dp + H2p * H1p) * itemsize         # weights
            + 2 * (H1p + H2p) * 4                           # biases
            + 3 * B_pad * 4                                 # labels/mask/logits
        ),
    )

    logits_tiles, loss_parts = pl.pallas_call(
        _two_tower_kernel,
        out_shape=out_shape,
        grid=(n_tiles,),
        in_specs=in_specs,
        out_specs=out_specs,
        compiler_params=pltpu.CompilerParams(
            dimension_semantics=("parallel",),
            vmem_limit_bytes=32 * 1024 * 1024,
        ),
        cost_estimate=cost,
    )(xq_t, xc_t,
      qw1_k, qb1_k, qw2_k, qb2_k,
      cw1_k, cb1_k, cw2_k, cb2_k,
      y_tiles, m_tiles)

    logits = logits_tiles.reshape(B_pad)[:B]
    loss = jnp.sum(loss_parts) / B

    # Matches: return (loss, (loss.detach(), logits.detach(), labels.detach()))
    aux = jax.lax.stop_gradient((loss, logits, labels_f))
    return loss, aux


# ------------------------------- glue / init ------------------------------ #
def sum_pool_embedding(table, ids):
    """EmbeddingBag with SUM pooling, fixed bag size (plain JAX glue).
    TODO(synk): fuse this gather+pool into the kernel via PrefetchScalarGridSpec."""
    return jnp.take(table, ids, axis=0).sum(axis=1)


def init_params(key, embedding_dim, layer_sizes, num_embeddings):
    ks = jax.random.split(key, 12)
    d, h1, h2 = embedding_dim, layer_sizes[0], layer_sizes[1]
    s = 0.05
    return dict(
        query_table=jax.random.normal(ks[0], (num_embeddings, d), jnp.float32) * s,
        cand_table=jax.random.normal(ks[1], (num_embeddings, d), jnp.float32) * s,
        qw1=jax.random.normal(ks[2], (d, h1), jnp.float32) * s,
        qb1=jax.random.normal(ks[3], (1, h1), jnp.float32) * s,
        qw2=jax.random.normal(ks[4], (h1, h2), jnp.float32) * s,
        qb2=jax.random.normal(ks[5], (1, h2), jnp.float32) * s,
        cw1=jax.random.normal(ks[6], (d, h1), jnp.float32) * s,
        cb1=jax.random.normal(ks[7], (1, h1), jnp.float32) * s,
        cw2=jax.random.normal(ks[8], (h1, h2), jnp.float32) * s,
        cb2=jax.random.normal(ks[9], (1, h2), jnp.float32) * s,
    )


if __name__ == "__main__":
    # Small, deterministic synthetic problem.
    B = 8                   # batch size
    D = 32                  # embedding_dim (shared by both embedding bags)
    LAYER_SIZES = [32, 32]  # torchrec MLP layer sizes
    NUM_EMB = 50            # rows per embedding table
    IDS_PER_SAMPLE = 3      # fixed "jagged" bag length for the synthetic KJT

    key = jax.random.PRNGKey(0)
    k_param, k_qids, k_cids, k_lab = jax.random.split(key, 4)

    params = init_params(k_param, D, LAYER_SIZES, NUM_EMB)

    query_ids = jax.random.randint(k_qids, (B, IDS_PER_SAMPLE), 0, NUM_EMB)
    cand_ids = jax.random.randint(k_cids, (B, IDS_PER_SAMPLE), 0, NUM_EMB)
    labels = jax.random.bernoulli(k_lab, 0.5, (B,)).astype(jnp.float32)

    # EmbeddingBagCollection (sum pooling) — plain JAX glue.
    q_pooled = sum_pool_embedding(params["query_table"], query_ids)
    c_pooled = sum_pool_embedding(params["cand_table"], cand_ids)

    loss, (loss_d, logits_d, labels_d) = two_tower_train_task_forward(
        q_pooled, c_pooled,
        params["qw1"], params["qb1"], params["qw2"], params["qb2"],
        params["cw1"], params["cb1"], params["cw2"], params["cb2"],
        labels,
    )
    jax.block_until_ready((loss, loss_d, logits_d, labels_d))

    # Pure-JAX reference mirroring the kernel's bf16 weight/activation casts
    # (accumulation, bias, ReLU and loss math stay in f32, as in the kernel).
    def ref():
        cdt = jnp.bfloat16
        c = lambda a: a.astype(cdt).astype(jnp.float32)

        def ref_tower(x, w1, b1, w2, b2):
            h = jnp.maximum(c(x) @ c(w1) + b1, 0.0)
            return jnp.maximum(c(h) @ c(w2) + b2, 0.0)

        qe = ref_tower(q_pooled, params["qw1"], params["qb1"], params["qw2"], params["qb2"])
        ce = ref_tower(c_pooled, params["cw1"], params["cb1"], params["cw2"], params["cb2"])
        lg = jnp.sum(qe * ce, axis=1)
        ls = jnp.mean(jnp.maximum(lg, 0.0) - lg * labels + jnp.log1p(jnp.exp(-jnp.abs(lg))))
        return ls, lg

    ref_loss, ref_logits = ref()
    assert logits_d.shape == (B,)
    assert jnp.allclose(loss, ref_loss, atol=1e-3), (loss, ref_loss)
    assert jnp.allclose(logits_d, ref_logits, atol=1e-3), (logits_d, ref_logits)
    assert jnp.allclose(labels_d, labels)

    print("KERNEL_OK")
</pallas_src>

<mosaic_0001>
module attributes {stable_mosaic.version = 11 : i64} {
  func.func @_two_tower_kernel(%arg0: i32, %arg1: memref<128x128xbf16, #tpu.memory_space<vmem>>, %arg2: memref<128x128xbf16, #tpu.memory_space<vmem>>, %arg3: memref<128x128xbf16, #tpu.memory_space<vmem>>, %arg4: memref<128x1xf32, #tpu.memory_space<vmem>>, %arg5: memref<128x128xbf16, #tpu.memory_space<vmem>>, %arg6: memref<128x1xf32, #tpu.memory_space<vmem>>, %arg7: memref<128x128xbf16, #tpu.memory_space<vmem>>, %arg8: memref<128x1xf32, #tpu.memory_space<vmem>>, %arg9: memref<128x128xbf16, #tpu.memory_space<vmem>>, %arg10: memref<128x1xf32, #tpu.memory_space<vmem>>, %arg11: memref<1x1x128xf32, #tpu.memory_space<vmem>>, %arg12: memref<1x1x128xf32, #tpu.memory_space<vmem>>, %arg13: memref<1x1x128xf32, #tpu.memory_space<vmem>>, %arg14: memref<1x1xf32, #tpu.memory_space<smem>>) attributes {dimension_semantics = [#tpu.dimension_semantics<parallel>], iteration_bounds = array<i64: 1>, scalar_prefetch = 0 : i64, scratch_operands = 0 : i64, tpu.core_type = #tpu.core_type<tc>, window_params = [{transform_indices = @transform_0, window_bounds = array<i64: 128, 128>}, {transform_indices = @transform_1, window_bounds = array<i64: 128, 128>}, {pipeline_mode = #tpu.pipeline_mode<synchronous>, transform_indices = @transform_2, window_bounds = array<i64: 128, 128>}, {pipeline_mode = #tpu.pipeline_mode<synchronous>, transform_indices = @transform_3, window_bounds = array<i64: 128, 1>}, {pipeline_mode = #tpu.pipeline_mode<synchronous>, transform_indices = @transform_4, window_bounds = array<i64: 128, 128>}, {pipeline_mode = #tpu.pipeline_mode<synchronous>, transform_indices = @transform_5, window_bounds = array<i64: 128, 1>}, {pipeline_mode = #tpu.pipeline_mode<synchronous>, transform_indices = @transform_6, window_bounds = array<i64: 128, 128>}, {pipeline_mode = #tpu.pipeline_mode<synchronous>, transform_indices = @transform_7, window_bounds = array<i64: 128, 1>}, {pipeline_mode = #tpu.pipeline_mode<synchronous>, transform_indices = @transform_8, window_bounds = array<i64: 128, 128>}, {pipeline_mode = #tpu.pipeline_mode<synchronous>, transform_indices = @transform_9, window_bounds = array<i64: 128, 1>}, {transform_indices = @transform_10, window_bounds = array<i64: 1, 1, 128>}, {transform_indices = @transform_11, window_bounds = array<i64: 1, 1, 128>}, {transform_indices = @transform_12, window_bounds = array<i64: 1, 1, 128>}, {transform_indices = @transform_13, window_bounds = array<i64: 1, 1>}]} {
    %c0 = arith.constant 0 : index
    %c0_0 = arith.constant 0 : index
    %0 = vector.load %arg1[%c0, %c0_0] : memref<128x128xbf16, #tpu.memory_space<vmem>>, vector<128x128xbf16>
    %c0_1 = arith.constant 0 : index
    %c0_2 = arith.constant 0 : index
    %1 = vector.load %arg3[%c0_1, %c0_2] : memref<128x128xbf16, #tpu.memory_space<vmem>>, vector<128x128xbf16>
    %cst = arith.constant dense<0.000000e+00> : vector<128x128xf32>
    %2 = tpu.matmul %1, %0, %cst {dimension_numbers = #tpu.dot_dimension_numbers<[1], [0], [0], [1], [0, 0, 1, 1], [], []>} : vector<128x128xbf16>, vector<128x128xbf16>, vector<128x128xf32> -> vector<128x128xf32>
    %c0_3 = arith.constant 0 : index
    %c0_4 = arith.constant 0 : index
    %3 = vector.load %arg4[%c0_3, %c0_4] : memref<128x1xf32, #tpu.memory_space<vmem>>, vector<128x1xf32>
    %4 = vector.broadcast %3 : vector<128x1xf32> to vector<128x128xf32>
    %5 = arith.addf %2, %4 : vector<128x128xf32>
    %cst_5 = arith.constant 0.000000e+00 : f32
    %6 = vector.broadcast %cst_5 : f32 to vector<128x128xf32>
    %7 = arith.maximumf %5, %6 : vector<128x128xf32>
    %8 = arith.truncf %7 : vector<128x128xf32> to vector<128x128xbf16>
    %c0_6 = arith.constant 0 : index
    %c0_7 = arith.constant 0 : index
    %9 = vector.load %arg5[%c0_6, %c0_7] : memref<128x128xbf16, #tpu.memory_space<vmem>>, vector<128x128xbf16>
    %cst_8 = arith.constant dense<0.000000e+00> : vector<128x128xf32>
    %10 = tpu.matmul %9, %8, %cst_8 {dimension_numbers = #tpu.dot_dimension_numbers<[1], [0], [0], [1], [0, 0, 1, 1], [], []>} : vector<128x128xbf16>, vector<128x128xbf16>, vector<128x128xf32> -> vector<128x128xf32>
    %c0_9 = arith.constant 0 : index
    %c0_10 = arith.constant 0 : index
    %11 = vector.load %arg6[%c0_9, %c0_10] : memref<128x1xf32, #tpu.memory_space<vmem>>, vector<128x1xf32>
    %12 = vector.broadcast %11 : vector<128x1xf32> to vector<128x128xf32>
    %13 = arith.addf %10, %12 : vector<128x128xf32>
    %cst_11 = arith.constant 0.000000e+00 : f32
    %14 = vector.broadcast %cst_11 : f32 to vector<128x128xf32>
    %15 = arith.maximumf %13, %14 : vector<128x128xf32>
    %c0_12 = arith.constant 0 : index
    %c0_13 = arith.constant 0 : index
    %16 = vector.load %arg2[%c0_12, %c0_13] : memref<128x128xbf16, #tpu.memory_space<vmem>>, vector<128x128xbf16>
    %c0_14 = arith.constant 0 : index
    %c0_15 = arith.constant 0 : index
    %17 = vector.load %arg7[%c0_14, %c0_15] : memref<128x128xbf16, #tpu.memory_space<vmem>>, vector<128x128xbf16>
    %cst_16 = arith.constant dense<0.000000e+00> : vector<128x128xf32>
    %18 = tpu.matmul %17, %16, %cst_16 {dimension_numbers = #tpu.dot_dimension_numbers<[1], [0], [0], [1], [0, 0, 1, 1], [], []>} : vector<128x128xbf16>, vector<128x128xbf16>, vector<128x128xf32> -> vector<128x128xf32>
    %c0_17 = arith.constant 0 : index
    %c0_18 = arith.constant 0 : index
    %19 = vector.load %arg8[%c0_17, %c0_18] : memref<128x1xf32, #tpu.memory_space<vmem>>, vector<128x1xf32>
    %20 = vector.broadcast %19 : vector<128x1xf32> to vector<128x128xf32>
    %21 = arith.addf %18, %20 : vector<128x128xf32>
    %cst_19 = arith.constant 0.000000e+00 : f32
    %22 = vector.broadcast %cst_19 : f32 to vector<128x128xf32>
    %23 = arith.maximumf %21, %22 : vector<128x128xf32>
    %24 = arith.truncf %23 : vector<128x128xf32> to vector<128x128xbf16>
    %c0_20 = arith.constant 0 : index
    %c0_21 = arith.constant 0 : index
    %25 = vector.load %arg9[%c0_20, %c0_21] : memref<128x128xbf16, #tpu.memory_space<vmem>>, vector<128x128xbf16>
    %cst_22 = arith.constant dense<0.000000e+00> : vector<128x128xf32>
    %26 = tpu.matmul %25, %24, %cst_22 {dimension_numbers = #tpu.dot_dimension_numbers<[1], [0], [0], [1], [0, 0, 1, 1], [], []>} : vector<128x128xbf16>, vector<128x128xbf16>, vector<128x128xf32> -> vector<128x128xf32>
    %c0_23 = arith.constant 0 : index
    %c0_24 = arith.constant 0 : index
    %27 = vector.load %arg10[%c0_23, %c0_24] : memref<128x1xf32, #tpu.memory_space<vmem>>, vector<128x1xf32>
    %28 = vector.broadcast %27 : vector<128x1xf32> to vector<128x128xf32>
    %29 = arith.addf %26, %28 : vector<128x128xf32>
    %cst_25 = arith.constant 0.000000e+00 : f32
    %30 = vector.broadcast %cst_25 : f32 to vector<128x128xf32>
    %31 = arith.maximumf %29, %30 : vector<128x128xf32>
    %32 = arith.mulf %15, %31 : vector<128x128xf32>
    %cst_26 = arith.constant dense<0.000000e+00> : vector<128xf32>
    %33 = vector.multi_reduction <add>, %32, %cst_26 [0] : vector<128x128xf32> to vector<128xf32>
    %34 = vector.shape_cast %33 : vector<128xf32> to vector<1x128xf32>
    %c0_27 = arith.constant 0 : index
    %c0_28 = arith.constant 0 : index
    %c0_29 = arith.constant 0 : index
    %35 = vector.load %arg13[%c0_27, %c0_28, %c0_29] : memref<1x1x128xf32, #tpu.memory_space<vmem>>, vector<1x1x128xf32>
    %36 = vector.shape_cast %35 : vector<1x1x128xf32> to vector<1x128xf32>
    %37 = vector.shape_cast %34 : vector<1x128xf32> to vector<1x1x128xf32>
    tpu.vector_store %arg13[%c0_27, %c0_28, %c0_29], %37 {strides = array<i32>} : memref<1x1x128xf32, #tpu.memory_space<vmem>>, vector<1x1x128xf32>,
    %c0_30 = arith.constant 0 : index
    %c0_31 = arith.constant 0 : index
    %c0_32 = arith.constant 0 : index
    %38 = vector.load %arg11[%c0_30, %c0_31, %c0_32] : memref<1x1x128xf32, #tpu.memory_space<vmem>>, vector<1x1x128xf32>
    %39 = vector.shape_cast %38 : vector<1x1x128xf32> to vector<1x128xf32>
    %c0_33 = arith.constant 0 : index
    %c0_34 = arith.constant 0 : index
    %c0_35 = arith.constant 0 : index
    %40 = vector.load %arg12[%c0_33, %c0_34, %c0_35] : memref<1x1x128xf32, #tpu.memory_space<vmem>>, vector<1x1x128xf32>
    %41 = vector.shape_cast %40 : vector<1x1x128xf32> to vector<1x128xf32>
    %cst_36 = arith.constant 0.000000e+00 : f32
    %42 = vector.broadcast %cst_36 : f32 to vector<1x128xf32>
    %43 = arith.maximumf %34, %42 : vector<1x128xf32>
    %44 = arith.mulf %34, %39 : vector<1x128xf32>
    %45 = arith.subf %43, %44 : vector<1x128xf32>
    %46 = math.absf %34 : vector<1x128xf32>
    %cst_37 = arith.constant 0.000000e+00 : f32
    %47 = vector.broadcast %cst_37 : f32 to vector<1x128xf32>
    %48 = arith.subf %47, %46 : vector<1x128xf32>
    %49 = math.exp %48 : vector<1x128xf32>
    %50 = math.log1p %49 : vector<1x128xf32>
    %51 = arith.addf %45, %50 : vector<1x128xf32>
    %52 = arith.mulf %51, %41 : vector<1x128xf32>
    %53 = vector.shape_cast %52 : vector<1x128xf32> to vector<1x1x128xf32>
    %cst_38 = arith.constant dense<0.000000e+00> : vector<1xf32>
    %54 = vector.multi_reduction <add>, %53, %cst_38 [1, 2] : vector<1x1x128xf32> to vector<1xf32>
    %55 = vector.shape_cast %54 : vector<1xf32> to vector<1x1x1xf32>
    %56 = vector.extract %55[0, 0, 0] : f32 from vector<1x1x1xf32>
    %c0_39 = arith.constant 0 : index
    %c0_40 = arith.constant 0 : index
    %57 = memref.load %arg14[%c0_39, %c0_40] : memref<1x1xf32, #tpu.memory_space<smem>>
    memref.store %56, %arg14[%c0_39, %c0_40] : memref<1x1xf32, #tpu.memory_space<smem>>
    return
  }
  func.func @transform_0(%arg0: i32) -> (i32, i32) {
    %c0_i32 = arith.constant 0 : i32
    %c0_i32_0 = arith.constant 0 : i32
    return %c0_i32, %arg0 : i32, i32
  }
  func.func @transform_1(%arg0: i32) -> (i32, i32) {
    %c0_i32 = arith.constant 0 : i32
    %c0_i32_0 = arith.constant 0 : i32
    return %c0_i32, %arg0 : i32, i32
  }
  func.func @transform_2(%arg0: i32) -> (i32, i32) {
    %c0_i32 = arith.constant 0 : i32
    %c0_i32_0 = arith.constant 0 : i32
    %c0_i32_1 = arith.constant 0 : i32
    return %c0_i32, %c0_i32_0 : i32, i32
  }
  func.func @transform_3(%arg0: i32) -> (i32, i32) {
    %c0_i32 = arith.constant 0 : i32
    %c0_i32_0 = arith.constant 0 : i32
    %c0_i32_1 = arith.constant 0 : i32
    return %c0_i32, %c0_i32_0 : i32, i32
  }
  func.func @transform_4(%arg0: i32) -> (i32, i32) {
    %c0_i32 = arith.constant 0 : i32
    %c0_i32_0 = arith.constant 0 : i32
    %c0_i32_1 = arith.constant 0 : i32
    return %c0_i32, %c0_i32_0 : i32, i32
  }
  func.func @transform_5(%arg0: i32) -> (i32, i32) {
    %c0_i32 = arith.constant 0 : i32
    %c0_i32_0 = arith.constant 0 : i32
    %c0_i32_1 = arith.constant 0 : i32
    return %c0_i32, %c0_i32_0 : i32, i32
  }
  func.func @transform_6(%arg0: i32) -> (i32, i32) {
    %c0_i32 = arith.constant 0 : i32
    %c0_i32_0 = arith.constant 0 : i32
    %c0_i32_1 = arith.constant 0 : i32
    return %c0_i32, %c0_i32_0 : i32, i32
  }
  func.func @transform_7(%arg0: i32) -> (i32, i32) {
    %c0_i32 = arith.constant 0 : i32
    %c0_i32_0 = arith.constant 0 : i32
    %c0_i32_1 = arith.constant 0 : i32
    return %c0_i32, %c0_i32_0 : i32, i32
  }
  func.func @transform_8(%arg0: i32) -> (i32, i32) {
    %c0_i32 = arith.constant 0 : i32
    %c0_i32_0 = arith.constant 0 : i32
    %c0_i32_1 = arith.constant 0 : i32
    return %c0_i32, %c0_i32_0 : i32, i32
  }
  func.func @transform_9(%arg0: i32) -> (i32, i32) {
    %c0_i32 = arith.constant 0 : i32
    %c0_i32_0 = arith.constant 0 : i32
    %c0_i32_1 = arith.constant 0 : i32
    return %c0_i32, %c0_i32_0 : i32, i32
  }
  func.func @transform_10(%arg0: i32) -> (i32, i32, i32) {
    %c0_i32 = arith.constant 0 : i32
    %c0_i32_0 = arith.constant 0 : i32
    %c0_i32_1 = arith.constant 0 : i32
    return %arg0, %c0_i32, %c0_i32_0 : i32, i32, i32
  }
  func.func @transform_11(%arg0: i32) -> (i32, i32, i32) {
    %c0_i32 = arith.constant 0 : i32
    %c0_i32_0 = arith.constant 0 : i32
    %c0_i32_1 = arith.constant 0 : i32
    return %arg0, %c0_i32, %c0_i32_0 : i32, i32, i32
  }
  func.func @transform_12(%arg0: i32) -> (i32, i32, i32) {
    %c0_i32 = arith.constant 0 : i32
    %c0_i32_0 = arith.constant 0 : i32
    %c0_i32_1 = arith.constant 0 : i32
    return %arg0, %c0_i32, %c0_i32_0 : i32, i32, i32
  }
  func.func @transform_13(%arg0: i32) -> (i32, i32) {
    %c0_i32 = arith.constant 0 : i32
    %c0_i32_0 = arith.constant 0 : i32
    return %arg0, %c0_i32 : i32, i32
  }
}

</mosaic_0001>

<bundles_post_ra>
// kernel: tpu_custom_call.1
= control target key start
LH: loop header
LB: loop body
LE: loop exit
PB: predicated region body
PF: predicated region fallthrough
CT: control target
= control target key end

     0   :  { %19 = vsyncpa [#allocation3], 0  ;;  %v1711_v1 = vmov 0   ;;  %s2216_s0 = inlined_call_operand.vmem [shape: bf16[128,128], index: 0, kind: input, shape index: {}]   ;;  %s2217_s1 = inlined_call_operand.vmem [shape: bf16[128,128], index: 1, kind: input, shape index: {}]   ;;  %s2218_s2 = inlined_call_operand.vmem [shape: bf16[128,128], index: 2, kind: input, shape index: {}]   ;;  %s2219_s3 = inlined_call_operand.vmem [shape: f32[128,1], index: 3, kind: input, shape index: {}]   ;;  %s2220_s4 = inlined_call_operand.vmem [shape: bf16[128,128], index: 4, kind: input, shape index: {}]   ;;  %s2221_s5 = inlined_call_operand.vmem [shape: f32[128,1], index: 5, kind: input, shape index: {}]   ;;  %s2222_s6 = inlined_call_operand.vmem [shape: bf16[128,128], index: 6, kind: input, shape index: {}]   ;;  %s2223_s7 = inlined_call_operand.vmem [shape: f32[128,1], index: 7, kind: input, shape index: {}]   ;;  %s2224_s8 = inlined_call_operand.vmem [shape: bf16[128,128], index: 8, kind: input, shape index: {}]   ;;  %s2225_s9 = inlined_call_operand.vmem [shape: f32[128,1], index: 9, kind: input, shape index: {}]   ;;  %s2226_s10 = inlined_call_operand.vmem [shape: f32[1,1,128], index: 10, kind: input, shape index: {}]   ;;  %s2227_s11 = inlined_call_operand.vmem [shape: f32[1,1,128], index: 11, kind: input, shape index: {}]   ;;  %s2228_s12 = inlined_call_operand.hbm [shape: f32[1,1,128], index: 12, kind: output, shape index: {0}]   ;;  %s2229_s13 = inlined_call_operand.hbm [shape: f32[1,1], index: 13, kind: output, shape index: {1}]  }
   0x1   :  { %v1627_v0 = vld [vmem:[%s2216_s0 + $0x38] sm:$0xff]   ;;  %1625 = vset.pattern.permute.xlu0 %v1711_v1  ;;  %v92_v2 = vld [vmem:[%s2219_s3 + $0x70] sm:$0xff]  ;;  %1626 = vset.pattern.permute.xlu1 %v1711_v1  ;;  %v90_v4 = vld [vmem:[%s2219_s3 + $0x60] sm:$0xff] }
   0x2   :  { %1492 = vmatprep.subr.bf16.mxu0 %v1627_v0  ;;  %166 = vperm.xlu0 %1625, %v92_v2   ;;  %v1628_v3 = vld [vmem:[%s2216_s0 + $0x30] sm:$0xff]   ;;  %v93_v5 = vld [vmem:[%s2219_s3 + $0x78] sm:$0xff]  ;;  %v1629_v6 = vld [vmem:[%s2216_s0 + $0x28] sm:$0xff]  }
   0x3   :  { %1493 = vmatpush3.bf16.msra.mxu0 %v1627_v0  ;;  %156 = vperm.xlu1 %1626, %v90_v4   ;;  %v91_v7 = vld [vmem:[%s2219_s3 + $0x68] sm:$0xff]  ;;  %v88_v8 = vld [vmem:[%s2219_s3 + $0x50] sm:$0xff]  ;;  %v1630_v9 = vld [vmem:[%s2216_s0 + $0x20] sm:$0xff]  }
   0x4   :  { %1494 = vmatprep.subr.bf16.mxu0 %v1628_v3  ;;  %v89_v10 = vld [vmem:[%s2219_s3 + $0x58] sm:$0xff]  ;;  %v86_v11 = vld [vmem:[%s2219_s3 + $0x40] sm:$0xff]  ;;  %v87_v13 = vld [vmem:[%s2219_s3 + $0x48] sm:$0xff] }
   0x5   :  { %v1631_v12 = vld [vmem:[%s2216_s0 + $0x18] sm:$0xff]   ;;  %v1635_v14 = vld [vmem:[%s2218_s2] sm:$0xff]   ;;  %v84_v15 = vld [vmem:[%s2219_s3 + $0x30] sm:$0xff] }
   0x6   :  { %171 = vperm.xlu0 %1625, %v93_v5   ;;  %v1632_v16 = vld [vmem:[%s2216_s0 + $0x10] sm:$0xff]   ;;  %v85_v17 = vld [vmem:[%s2219_s3 + $0x38] sm:$0xff]  ;;  %1508 = vmatprep.mubr.bf16.mxu0 %v1635_v14  ;;  %v82_v18 = vld [vmem:[%s2219_s3 + $0x20] sm:$0xff] }
   0x7   :  { %1495 = vmatpush3.bf16.msra.mxu0 %v1628_v3  ;;  %161 = vperm.xlu1 %1626, %v91_v7   ;;  %v1633_v19 = vld [vmem:[%s2216_s0 + $0x8] sm:$0xff]   ;;  %v80_v21 = vld [vmem:[%s2219_s3 + $0x10] sm:$0xff]  ;;  %v1634_v22 = vld [vmem:[%s2216_s0] sm:$0xff]  }
   0x8   :  { %1496 = vmatprep.subr.bf16.mxu0 %v1629_v6  ;;  %v83_v20 = vld [vmem:[%s2219_s3 + $0x28] sm:$0xff]  ;;  %v81_v23 = vld [vmem:[%s2219_s3 + $0x18] sm:$0xff]  ;;  %v78_v24 = vld [vmem:[%s2219_s3] sm:$0xff] }
   0x9   :  { %v1637_v25 = vld [vmem:[%s2217_s1 + $0x38] sm:$0xff]   ;;  %v79_v26 = vld [vmem:[%s2219_s3 + $0x8] sm:$0xff]  ;;  %v710_v28 = vld [vmem:[%s2223_s7 + $0x70] sm:$0xff] }
   0xa   :  { %146 = vperm.xlu0 %1625, %v88_v8   ;;  %v1636_v27 = vld [vmem:[%s2218_s2 + $0x8] sm:$0xff]   ;;  %v1638_v29 = vld [vmem:[%s2217_s1 + $0x30] sm:$0xff]   ;;  %v711_v30 = vld [vmem:[%s2223_s7 + $0x78] sm:$0xff] }
   0xb   :  { %1497 = vmatpush3.bf16.msra.mxu0 %v1629_v6  ;;  %151 = vperm.xlu1 %1626, %v89_v10   ;;  %v1639_v31 = vld [vmem:[%s2218_s2 + $0x10] sm:$0xff]   ;;  %v708_v32 = vld [vmem:[%s2223_s7 + $0x60] sm:$0xff]  ;;  %v1641_v33 = vld [vmem:[%s2217_s1 + $0x28] sm:$0xff]  }
   0xc   :  { %1498 = vmatprep.subr.bf16.mxu0 %v1630_v9  ;;  %v709_v34 = vld [vmem:[%s2223_s7 + $0x68] sm:$0xff]  ;;  %v1640_v35 = vld [vmem:[%s2218_s2 + $0x18] sm:$0xff]   ;;  %v706_v36 = vld [vmem:[%s2223_s7 + $0x50] sm:$0xff] }
   0xd   :  { %v1642_v37 = vld [vmem:[%s2217_s1 + $0x20] sm:$0xff]   ;;  %v707_v38 = vld [vmem:[%s2223_s7 + $0x58] sm:$0xff]  ;;  %v705_v42 = vld [vmem:[%s2223_s7 + $0x48] sm:$0xff] }
   0xe   :  { %136 = vperm.xlu0 %1625, %v86_v11   ;;  %v1643_v39 = vld [vmem:[%s2218_s2 + $0x20] sm:$0xff]   ;;  %v1645_v41 = vld [vmem:[%s2217_s1 + $0x18] sm:$0xff]   ;;  %v1644_v43 = vld [vmem:[%s2218_s2 + $0x28] sm:$0xff]  }
   0xf   :  { %1499 = vmatpush3.bf16.msra.mxu0 %v1630_v9  ;;  %141 = vperm.xlu1 %1626, %v87_v13   ;;  %v704_v40 = vld [vmem:[%s2223_s7 + $0x40] sm:$0xff]  ;;  %v702_v44 = vld [vmem:[%s2223_s7 + $0x30] sm:$0xff]  ;;  %v703_v46 = vld [vmem:[%s2223_s7 + $0x38] sm:$0xff] }
  0x10   :  { %1500 = vmatprep.subr.bf16.mxu0 %v1631_v12  ;;  %v1646_v45 = vld [vmem:[%s2217_s1 + $0x10] sm:$0xff]   ;;  %v700_v48 = vld [vmem:[%s2223_s7 + $0x20] sm:$0xff]  ;;  %v1648_v49 = vld [vmem:[%s2218_s2 + $0x38] sm:$0xff]  }
  0x11   :  { %v1647_v47 = vld [vmem:[%s2218_s2 + $0x30] sm:$0xff]   ;;  %v1649_v50 = vld [vmem:[%s2217_s1 + $0x8] sm:$0xff]   ;;  %v1650_v53 = vld [vmem:[%s2217_s1] sm:$0xff]  }
  0x12   :  { %126 = vperm.xlu0 %1625, %v84_v15   ;;  %v701_v51 = vld [vmem:[%s2223_s7 + $0x28] sm:$0xff]  ;;  %v698_v52 = vld [vmem:[%s2223_s7 + $0x10] sm:$0xff]  ;;  %v699_v54 = vld [vmem:[%s2223_s7 + $0x18] sm:$0xff] }
  0x13   :  { %1501 = vmatpush3.bf16.msra.mxu0 %v1631_v12  ;;  %131 = vperm.xlu1 %1626, %v85_v17   ;;  %v1651_v55 = vld [vmem:[%s2222_s6] sm:$0xff]   ;;  %v697_v57 = vld [vmem:[%s2223_s7 + $0x8] sm:$0xff]  ;;  %v1653_v60 = vld [vmem:[%s2222_s6 + $0x10] sm:$0xff]  }
  0x14   :  { %1502 = vmatprep.subr.bf16.mxu0 %v1632_v16  ;;  %v696_v56 = vld [vmem:[%s2223_s7] sm:$0xff]  ;;  %v1652_v58 = vld [vmem:[%s2222_s6 + $0x8] sm:$0xff]  }
  0x15   :  { %v407_v59 = vld [vmem:[%s2221_s5] sm:$0xff]  ;;  %v408_v61 = vld [vmem:[%s2221_s5 + $0x8] sm:$0xff] }
  0x16   :  { %116 = vperm.xlu0 %1625, %v82_v18  }
  0x17   :  { %1503 = vmatpush3.bf16.msra.mxu0 %v1632_v16  ;;  %121 = vperm.xlu1 %1626, %v83_v20  }
  0x18   :  { %1504 = vmatprep.subr.bf16.mxu0 %v1633_v19 }
  0x1a   :  { %106 = vperm.xlu0 %1625, %v80_v21  }
  0x1b   :  { %1505 = vmatpush3.bf16.msra.mxu0 %v1633_v19  ;;  %111 = vperm.xlu1 %1626, %v81_v23  }
  0x1c   :  { %1506 = vmatprep.subr.bf16.mxu0 %v1634_v22 }
  0x1e   :  { %96 = vperm.xlu0 %1625, %v78_v24  }
  0x1f   :  { %1507 = vmatpush3.bf16.msra.mxu0 %v1634_v22  ;;  %101 = vperm.xlu1 %1626, %v79_v26  }
  0x20   :  { %1556 = vmatprep.subr.bf16.mxu0 %v1637_v25 }
  0x22   :  { %1509 = vmatmul.mubr.bf16.vlgmr.msra.gmra.mxu0 %v1636_v27  ;;  %784 = vperm.xlu0 %1625, %v710_v28  }
  0x23   :  { %1557 = vmatpush3.bf16.msra.mxu0 %v1637_v25  ;;  %789 = vperm.xlu1 %1626, %v711_v30  }
  0x24   :  { %1558 = vmatprep.subr.bf16.mxu0 %v1638_v29  ;;  %1512 = vmatprep.mubr.bf16.mxu0 %v1639_v31 }
  0x26   :  { %774 = vperm.xlu0 %1625, %v708_v32  }
  0x27   :  { %1559 = vmatpush3.bf16.msra.mxu0 %v1638_v29  ;;  %779 = vperm.xlu1 %1626, %v709_v34  }
  0x28   :  { %1560 = vmatprep.subr.bf16.mxu0 %v1641_v33 }
  0x2a   :  { %1513 = vmatmul.mubr.bf16.gmra.mxu0 %v1640_v35  ;;  %764 = vperm.xlu0 %1625, %v706_v36  }
  0x2b   :  { %1561 = vmatpush3.bf16.msra.mxu0 %v1641_v33  ;;  %769 = vperm.xlu1 %1626, %v707_v38  }
  0x2c   :  { %1562 = vmatprep.subr.bf16.mxu0 %v1642_v37  ;;  %1516 = vmatprep.mubr.bf16.mxu0 %v1643_v39 }
  0x2e   :  { %754 = vperm.xlu0 %1625, %v704_v40  }
  0x2f   :  { %1563 = vmatpush3.bf16.msra.mxu0 %v1642_v37  ;;  %759 = vperm.xlu1 %1626, %v705_v42  }
  0x30   :  { %1564 = vmatprep.subr.bf16.mxu0 %v1645_v41 }
  0x32   :  { %1517 = vmatmul.mubr.bf16.gmra.mxu0 %v1644_v43  ;;  %744 = vperm.xlu0 %1625, %v702_v44  }
  0x33   :  { %1565 = vmatpush3.bf16.msra.mxu0 %v1645_v41  ;;  %749 = vperm.xlu1 %1626, %v703_v46  }
  0x34   :  { %1566 = vmatprep.subr.bf16.mxu0 %v1646_v45  ;;  %1520 = vmatprep.mubr.bf16.mxu0 %v1647_v47 }
  0x36   :  { %734 = vperm.xlu0 %1625, %v700_v48  }
  0x37   :  { %1567 = vmatpush3.bf16.msra.mxu0 %v1646_v45  ;;  %739 = vperm.xlu1 %1626, %v701_v51  }
  0x38   :  { %1568 = vmatprep.subr.bf16.mxu0 %v1649_v50 }
  0x3a   :  { %1521 = vmatmul.mubr.bf16.gmra.mxu0 %v1648_v49  ;;  %724 = vperm.xlu0 %1625, %v698_v52  }
  0x3b   :  { %1569 = vmatpush3.bf16.msra.mxu0 %v1649_v50  ;;  %729 = vperm.xlu1 %1626, %v699_v54  }
  0x3c   :  { %1570 = vmatprep.subr.bf16.mxu0 %v1650_v53  ;;  %1572 = vmatprep.mubr.bf16.mxu0 %v1651_v55 }
  0x3e   :  { %714 = vperm.xlu0 %1625, %v696_v56  }
  0x3f   :  { %1571 = vmatpush3.bf16.msra.mxu0 %v1650_v53  ;;  %719 = vperm.xlu1 %1626, %v697_v57  }
  0x40   :  { %20 = vsyncpa [#allocation4], 0  ;;  %v1025_v62 = vld [vmem:[%s2225_s9] sm:$0xff]  ;;  %v1026_v63 = vld [vmem:[%s2225_s9 + $0x8] sm:$0xff]  ;;  %vm1340_vm1 = vcmask 1040384  }
  0x41   :  { %v1654_v0 = vld [vmem:[%s2222_s6 + $0x18] sm:$0xff]   ;;  %v409_v1 = vld [vmem:[%s2221_s5 + $0x10] sm:$0xff]  ;;  %v1655_v2 = vld [vmem:[%s2222_s6 + $0x20] sm:$0xff]  }
  0x42   :  { %1573 = vmatmul.mubr.bf16.vlgmr.msra.gmra.mxu0 %v1652_v58  ;;  %425 = vperm.xlu0 %1625, %v407_v59   ;;  %v1027_v3 = vld [vmem:[%s2225_s9 + $0x10] sm:$0xff]  ;;  %v410_v4 = vld [vmem:[%s2221_s5 + $0x18] sm:$0xff]  ;;  %v1656_v6 = vld [vmem:[%s2222_s6 + $0x28] sm:$0xff]  }
  0x43   :  { %430 = vperm.xlu1 %1626, %v408_v61   ;;  %1576 = vmatprep.mubr.bf16.mxu0 %v1653_v60  ;;  %v1028_v5 = vld [vmem:[%s2225_s9 + $0x18] sm:$0xff]  ;;  %v411_v7 = vld [vmem:[%s2221_s5 + $0x20] sm:$0xff]  ;;  %v1657_v8 = vld [vmem:[%s2222_s6 + $0x30] sm:$0xff]  }
  0x44   :  { %v1029_v9 = vld [vmem:[%s2225_s9 + $0x20] sm:$0xff]  ;;  %v412_v10 = vld [vmem:[%s2221_s5 + $0x28] sm:$0xff]  ;;  %v1658_v12 = vld [vmem:[%s2222_s6 + $0x38] sm:$0xff]  }
  0x45   :  { %v1030_v11 = vld [vmem:[%s2225_s9 + $0x28] sm:$0xff]  ;;  %v413_v13 = vld [vmem:[%s2221_s5 + $0x30] sm:$0xff]  ;;  %v414_v15 = vld [vmem:[%s2221_s5 + $0x38] sm:$0xff] }
  0x46   :  { %1043 = vperm.xlu0 %1625, %v1025_v62   ;;  %v1031_v14 = vld [vmem:[%s2225_s9 + $0x30] sm:$0xff]  ;;  %v1032_v16 = vld [vmem:[%s2225_s9 + $0x38] sm:$0xff]  ;;  %v415_v17 = vld [vmem:[%s2221_s5 + $0x40] sm:$0xff] }
  0x47   :  { %1048 = vperm.xlu1 %1626, %v1026_v63   ;;  %v1033_v18 = vld [vmem:[%s2225_s9 + $0x40] sm:$0xff]  ;;  %v416_v19 = vld [vmem:[%s2221_s5 + $0x48] sm:$0xff]  ;;  %v417_v21 = vld [vmem:[%s2221_s5 + $0x50] sm:$0xff] }
  0x48   :  { %v1034_v20 = vld [vmem:[%s2225_s9 + $0x48] sm:$0xff]  ;;  %v1035_v22 = vld [vmem:[%s2225_s9 + $0x50] sm:$0xff]  ;;  %v418_v23 = vld [vmem:[%s2221_s5 + $0x58] sm:$0xff] }
  0x49   :  { %v1036_v24 = vld [vmem:[%s2225_s9 + $0x58] sm:$0xff]  ;;  %v419_v25 = vld [vmem:[%s2221_s5 + $0x60] sm:$0xff]  ;;  %v420_v27 = vld [vmem:[%s2221_s5 + $0x68] sm:$0xff] }
  0x4a   :  { %1577 = vmatmul.mubr.bf16.gmra.mxu0 %v1654_v0  ;;  %435 = vperm.xlu0 %1625, %v409_v1   ;;  %v1037_v26 = vld [vmem:[%s2225_s9 + $0x60] sm:$0xff]  ;;  %v1038_v28 = vld [vmem:[%s2225_s9 + $0x68] sm:$0xff]  ;;  %v421_v29 = vld [vmem:[%s2221_s5 + $0x70] sm:$0xff] }
  0x4b   :  { %1053 = vperm.xlu1 %1626, %v1027_v3   ;;  %1580 = vmatprep.mubr.bf16.mxu0 %v1655_v2  ;;  %v1039_v30 = vld [vmem:[%s2225_s9 + $0x70] sm:$0xff]  ;;  %v422_v31 = vld [vmem:[%s2221_s5 + $0x78] sm:$0xff]  ;;  %v1659_v33 = vld [vmem:[%s2220_s4] sm:$0xff]  }
  0x4c   :  { %v1040_v32 = vld [vmem:[%s2225_s9 + $0x78] sm:$0xff]  ;;  %1540 = vmatprep.mubr.bf16.mxu1 %v1659_v33 }
  0x4e   :  { %440 = vperm.xlu0 %1625, %v410_v4  }
  0x4f   :  { %1058 = vperm.xlu1 %1626, %v1028_v5  }
  0x52   :  { %1581 = vmatmul.mubr.bf16.gmra.mxu0 %v1656_v6  ;;  %445 = vperm.xlu0 %1625, %v411_v7  }
  0x53   :  { %1063 = vperm.xlu1 %1626, %v1029_v9   ;;  %1584 = vmatprep.mubr.bf16.mxu0 %v1657_v8 }
  0x56   :  { %450 = vperm.xlu0 %1625, %v412_v10  }
  0x57   :  { %1068 = vperm.xlu1 %1626, %v1030_v11  }
  0x5a   :  { %1585 = vmatmul.mubr.bf16.gmra.mxu0 %v1658_v12  ;;  %455 = vperm.xlu0 %1625, %v413_v13  }
  0x5b   :  { %1073 = vperm.xlu1 %1626, %v1031_v14  }
  0x5e   :  { %460 = vperm.xlu0 %1625, %v414_v15  }
  0x5f   :  { %1078 = vperm.xlu1 %1626, %v1032_v16  }
  0x62   :  { %465 = vperm.xlu0 %1625, %v415_v17  }
  0x63   :  { %1083 = vperm.xlu1 %1626, %v1033_v18  }
  0x66   :  { %470 = vperm.xlu0 %1625, %v416_v19  }
  0x67   :  { %1088 = vperm.xlu1 %1626, %v1034_v20  }
  0x6a   :  { %475 = vperm.xlu0 %1625, %v417_v21  }
  0x6b   :  { %1093 = vperm.xlu1 %1626, %v1035_v22  }
  0x6e   :  { %480 = vperm.xlu0 %1625, %v418_v23  }
  0x6f   :  { %1098 = vperm.xlu1 %1626, %v1036_v24  }
  0x72   :  { %485 = vperm.xlu0 %1625, %v419_v25  }
  0x73   :  { %1103 = vperm.xlu1 %1626, %v1037_v26  }
  0x76   :  { %490 = vperm.xlu0 %1625, %v420_v27  }
  0x77   :  { %1108 = vperm.xlu1 %1626, %v1038_v28  }
  0x7a   :  { %495 = vperm.xlu0 %1625, %v421_v29  }
  0x7b   :  { %1113 = vperm.xlu1 %1626, %v1039_v30  }
  0x7d   :  { %v167_v35 = vpop.permute.xlu0 %166 }
  0x7e   :  { %500 = vperm.xlu0 %1625, %v422_v31   ;;  %v157_v34 = vpop.permute.xlu1 %156 }
  0x7f   :  { %1118 = vperm.xlu1 %1626, %v1040_v32  }
  0x81   :  { %v172_v37 = vpop.permute.xlu0 %171 }
  0x82   :  { %v162_v36 = vpop.permute.xlu1 %161 }
  0x85   :  { %v147_v42 = vpop.permute.xlu0 %146 }
  0x86   :  { %v152_v40 = vpop.permute.xlu1 %151 }
  0x89   :  { %v137_v47 = vpop.permute.xlu0 %136 }
  0x8a   :  { %v142_v45 = vpop.permute.xlu1 %141 }
  0x8d   :  { %v127_v52 = vpop.permute.xlu0 %126 }
  0x8e   :  { %v132_v50 = vpop.permute.xlu1 %131 }
  0x91   :  { %v117_v57 = vpop.permute.xlu0 %116 }
  0x92   :  { %v122_v55 = vpop.permute.xlu1 %121 }
  0x95   :  { %v107_v1 = vpop.permute.xlu0 %106 }
  0x96   :  { %v112_v61 = vpop.permute.xlu1 %111 }
  0x99   :  { %v97_v17 = vpop.permute.xlu0 %96 }
  0x9a   :  { %v102_v12 = vpop.permute.xlu1 %101 }
  0x9d   :  { %v785_v29 = vpop.permute.xlu0 %784 }
  0x9e   :  { %v790_v25 = vpop.permute.xlu1 %789 }
  0xe2   :  { %v2075_v38 = vpop.f32.mrf.mxu0 }
  0xe4   :  { %v2077_v39 = vpop.f32.mrf.mxu0 }
  0xe6   :  { %v2079_v41 = vpop.f32.mrf.mxu0 }
  0xe8   :  { %v2081_v43 = vpop.f32.mrf.mxu0 }
  0xea   :  { %v1514_v44 = vpop.f32.mrf.mxu0 }
  0xeb   :  { %v329_v27 = vadd.f32 %v1514_v44, %v127_v52 }
  0xec   :  { %v320_v46 = vpop.f32.mrf.mxu0 }
  0xee   :  { %v1515_v48 = vpop.f32.mrf.mxu0 }
  0xef   :  { %v332_v22 = vadd.f32 %v1515_v48, %v132_v50  ;;  %v313_v50 = vadd.f32 %v2075_v38, %v107_v1 }
  0xf0   :  { %v323_v49 = vpop.f32.mrf.mxu0 }
  0xf1   :  { %v374_v31 = vmax.f32 %v332_v22, 0.0  ;;  %v324_v32 = vadd.f32 %v323_v49, %v122_v55 }
  0xf2   :  { %v1518_v51 = vpop.f32.mrf.mxu0 }
  0xf3   :  { %v345_v8 = vadd.f32 %v1518_v51, %v147_v42  ;;  %v316_v42 = vadd.f32 %v2079_v41, %v112_v61  ;;  %v305_v41 = vadd.f32 %v2077_v39, %v97_v17 }
  0xf4   :  { %v336_v53 = vpop.f32.mrf.mxu0 }
  0xf5   :  { %v377_v19 = vmax.f32 %v345_v8, 0.0  ;;  %v337_v20 = vadd.f32 %v336_v53, %v137_v47  ;;  %v775_v47 = vpop.permute.xlu0 %774  ;;  %v370_v52 = vmax.f32 %v316_v42, 0.0  ;;  %v308_v53 = vadd.f32 %v2081_v43, %v102_v12  ;;  %v1661_v12 = vld [vmem:[%s2220_s4 + $0x10] sm:$0xff]  }
  0xf6   :  { %v1519_v54 = vpop.f32.mrf.mxu0  ;;  %v367_v61 = vmax.f32 %v305_v41, 0.0 }
  0xf7   :  { %v348_v3 = vadd.f32 %v1519_v54, %v152_v40  ;;  %v375_v28 = vmax.f32 %v337_v20, 0.0 }
  0xf8   :  { %v339_v56 = vpop.f32.mrf.mxu0 }
  0xf9   :  { %v378_v14 = vmax.f32 %v348_v3, 0.0  ;;  %v340_v15 = vadd.f32 %v339_v56, %v142_v45  ;;  %v372_v45 = vmax.f32 %v324_v32, 0.0  ;;  %v369_v56 = vmax.f32 %v313_v50, 0.0  ;;  %v1662_v32 = vld [vmem:[%s2220_s4 + $0x18] sm:$0xff]  }
  0xfa   :  { %v1522_v58 = vpop.f32.mrf.mxu0 }
  0xfb   :  { %v361_v60 = vadd.f32 %v1522_v58, %v167_v35  ;;  %v388_v23 = vpack.c.bf16 %v378_v14, %v377_v19  ;;  %v376_v24 = vmax.f32 %v340_v15, 0.0  ;;  %v373_v35 = vmax.f32 %v329_v27, 0.0 }
  0xfc   :  { %v352_v59 = vpop.f32.mrf.mxu0 }
  0xfd   :  { %v353_v63 = vadd.f32 %v352_v59, %v157_v34  ;;  %v381_v4 = vmax.f32 %v361_v60, 0.0  ;;  %v387_v33 = vpack.c.bf16 %v376_v24, %v375_v28  ;;  %v386_v44 = vpack.c.bf16 %v374_v31, %v373_v35  ;;  %v1663_v35 = vld [vmem:[%s2220_s4 + $0x20] sm:$0xff]  }
  0xfe   :  { %v1523_v62 = vpop.f32.mrf.mxu0  ;;  %v384_v59 = vpack.c.bf16 %v370_v52, %v369_v56  ;;  %v368_v60 = vmax.f32 %v308_v53, 0.0 }
  0xff   :  { %v364_v0 = vadd.f32 %v1523_v62, %v172_v37  ;;  %v379_v9 = vmax.f32 %v353_v63, 0.0  ;;  %v780_v37 = vpop.permute.xlu1 %779 }
 0x100   :  { %v355_v2 = vpop.f32.mrf.mxu0 }
 0x101   :  { %v382_v5 = vmax.f32 %v364_v0, 0.0  ;;  %v356_v6 = vadd.f32 %v355_v2, %v162_v36  ;;  %v321_v36 = vadd.f32 %v320_v46, %v117_v57  ;;  %v765_v57 = vpop.permute.xlu0 %764  ;;  %v383_v0 = vpack.c.bf16 %v368_v60, %v367_v61  ;;  %v1669_v61 = vld [vmem:[%s2224_s8 + $0x10] sm:$0xff]  }
 0x102   :  { %v2083_v7 = vpop.f32.mrf.mxu0 }
 0x103   :  { %v380_v10 = vmax.f32 %v356_v6, 0.0  ;;  %v390_v11 = vpack.c.bf16 %v382_v5, %v381_v4  ;;  %v371_v49 = vmax.f32 %v321_v36, 0.0  ;;  %v770_v54 = vpop.permute.xlu1 %769 }
 0x104   :  { %v2085_v13 = vpop.f32.mrf.mxu0 }
 0x105   :  { %v389_v16 = vpack.c.bf16 %v380_v10, %v379_v9  ;;  %1524 = vmatprep.subr.bf16.mxu1 %v390_v11  ;;  %v385_v46 = vpack.c.bf16 %v372_v45, %v371_v49  ;;  %v755_v1 = vpop.permute.xlu0 %754  ;;  %v1660_v10 = vld [vmem:[%s2220_s4 + $0x8] sm:$0xff]  }
 0x106   :  { %1525 = vmatpush3.bf16.msra.mxu1 %v390_v11  ;;  %v2087_v18 = vpop.f32.mrf.mxu0 }
 0x107   :  { %1526 = vmatprep.subr.bf16.mxu1 %v389_v16  ;;  %v760_v62 = vpop.permute.xlu1 %759 }
 0x108   :  { %v2089_v21 = vpop.f32.mrf.mxu0 }
 0x109   :  { %v745_v19 = vpop.permute.xlu0 %744 }
 0x10a   :  { %1527 = vmatpush3.bf16.msra.mxu1 %v389_v16  ;;  %v2091_v26 = vpop.f32.mrf.mxu0 }
 0x10b   :  { %1528 = vmatprep.subr.bf16.mxu1 %v388_v23  ;;  %v750_v11 = vpop.permute.xlu1 %749  ;;  %v947_v36 = vadd.f32 %v2091_v26, %v745_v19  ;;  %v1664_v26 = vld [vmem:[%s2220_s4 + $0x28] sm:$0xff]  }
 0x10c   :  { %v2093_v30 = vpop.f32.mrf.mxu0 }
 0x10e   :  { %1529 = vmatpush3.bf16.msra.mxu1 %v388_v23  ;;  %v2095_v34 = vpop.f32.mrf.mxu0 }
 0x10f   :  { %1530 = vmatprep.subr.bf16.mxu1 %v387_v33  ;;  %v740_v27 = vpop.permute.xlu1 %739  ;;  %v950_v28 = vadd.f32 %v2095_v34, %v750_v11 }
 0x110   :  { %v2097_v40 = vpop.f32.mrf.mxu0 }
 0x111   :  { %v992_v42 = vmax.f32 %v950_v28, 0.0 }
 0x112   :  { %1531 = vmatpush3.bf16.msra.mxu1 %v387_v33  ;;  %v1582_v48 = vpop.f32.mrf.mxu0  ;;  %v735_v33 = vpop.permute.xlu0 %734 }
 0x113   :  { %1532 = vmatprep.subr.bf16.mxu1 %v386_v44  ;;  %v963_v14 = vadd.f32 %v1582_v48, %v765_v57  ;;  %v730_v45 = vpop.permute.xlu1 %729  ;;  %v939_v48 = vadd.f32 %v2093_v30, %v735_v33 }
 0x114   :  { %v954_v51 = vpop.f32.mrf.mxu0  ;;  %v934_v49 = vadd.f32 %v2087_v18, %v730_v45 }
 0x115   :  { %v995_v24 = vmax.f32 %v963_v14, 0.0 }
 0x116   :  { %1533 = vmatpush3.bf16.msra.mxu1 %v386_v44  ;;  %v1583_v55 = vpop.f32.mrf.mxu0  ;;  %v942_v44 = vadd.f32 %v2097_v40, %v740_v27  ;;  %v725_v50 = vpop.permute.xlu0 %724  ;;  %v1665_v40 = vld [vmem:[%s2220_s4 + $0x30] sm:$0xff]  }
 0x117   :  { %1534 = vmatprep.subr.bf16.mxu1 %v385_v46  ;;  %v966_v5 = vadd.f32 %v1583_v55, %v770_v54  ;;  %v931_v53 = vadd.f32 %v2083_v7, %v725_v50  ;;  %v720_v30 = vpop.permute.xlu1 %719  ;;  %v988_v54 = vmax.f32 %v934_v49, 0.0  ;;  %v1666_v7 = vld [vmem:[%s2220_s4 + $0x38] sm:$0xff]  }
 0x118   :  { %v957_v58 = vpop.f32.mrf.mxu0  ;;  %v990_v52 = vmax.f32 %v942_v44, 0.0  ;;  %v926_v55 = vadd.f32 %v2089_v21, %v720_v30  ;;  %v1667_v21 = vld [vmem:[%s2224_s8] sm:$0xff]  }
 0x119   :  { %v996_v20 = vmax.f32 %v966_v5, 0.0  ;;  %v958_v22 = vadd.f32 %v957_v58, %v760_v62  ;;  %v987_v41 = vmax.f32 %v931_v53, 0.0  ;;  %v1670_v62 = vld [vmem:[%s2224_s8 + $0x18] sm:$0xff]  }
 0x11a   :  { %1535 = vmatpush3.bf16.msra.mxu1 %v385_v46  ;;  %v1586_v38 = vpop.f32.mrf.mxu0  ;;  %v989_v46 = vmax.f32 %v939_v48, 0.0  ;;  %v715_v56 = vpop.permute.xlu0 %714 }
 0x11b   :  { %1536 = vmatprep.subr.bf16.mxu1 %v384_v59  ;;  %v979_v43 = vadd.f32 %v1586_v38, %v785_v29  ;;  %v1006_v29 = vpack.c.bf16 %v996_v20, %v995_v24  ;;  %v994_v31 = vmax.f32 %v958_v22, 0.0  ;;  %v923_v57 = vadd.f32 %v2085_v13, %v715_v56  ;;  %v1668_v13 = vld [vmem:[%s2224_s8 + $0x8] sm:$0xff]  }
 0x11c   :  { %v970_v63 = vpop.f32.mrf.mxu0  ;;  %v1003_v18 = vpack.c.bf16 %v990_v52, %v989_v46  ;;  %v1002_v58 = vpack.c.bf16 %v988_v54, %v987_v41 }
 0x11d   :  { %v971_v3 = vadd.f32 %v970_v63, %v775_v47  ;;  %v999_v6 = vmax.f32 %v979_v43, 0.0  ;;  %v991_v47 = vmax.f32 %v947_v36, 0.0  ;;  %v985_v60 = vmax.f32 %v923_v57, 0.0  ;;  %v1671_v63 = vld [vmem:[%s2224_s8 + $0x20] sm:$0xff]   ;;  %v1673_v43 = vld [vmem:[%s2224_s8 + $0x30] sm:$0xff]  }
 0x11e   :  { %1537 = vmatpush3.bf16.msra.mxu1 %v384_v59  ;;  %v1587_v2 = vpop.f32.mrf.mxu0  ;;  %v986_v59 = vmax.f32 %v926_v55, 0.0 }
 0x11f   :  { %v982_v4 = vadd.f32 %v1587_v2, %v790_v25  ;;  %1538 = vmatprep.subr.bf16.mxu1 %v383_v0  ;;  %v997_v15 = vmax.f32 %v971_v3, 0.0  ;;  %v955_v25 = vadd.f32 %v954_v51, %v755_v1  ;;  %v1004_v51 = vpack.c.bf16 %v992_v42, %v991_v47  ;;  %v1674_v1 = vld [vmem:[%s2224_s8 + $0x38] sm:$0xff]   ;;  %v431_v2 = vpop.permute.xlu1 %430  ;;  %v426_v3 = vpop.permute.xlu0 %425 }
 0x120   :  { %v973_v39 = vpop.f32.mrf.mxu0  ;;  %v1001_v38 = vpack.c.bf16 %v986_v59, %v985_v60 }
 0x121   :  { %v1000_v8 = vmax.f32 %v982_v4, 0.0  ;;  %v974_v9 = vadd.f32 %v973_v39, %v780_v37  ;;  %v993_v37 = vmax.f32 %v955_v25, 0.0 }
 0x122   :  { %1539 = vmatpush3.bf16.msra.mxu1 %v383_v0  ;;  %v1672_v0 = vld [vmem:[%s2224_s8 + $0x28] sm:$0xff]  }
 0x123   :  { %v1008_v16 = vpack.c.bf16 %v1000_v8, %v999_v6  ;;  %v998_v17 = vmax.f32 %v974_v9, 0.0  ;;  %v1005_v34 = vpack.c.bf16 %v994_v31, %v993_v37  ;;  %v1049_v4 = vpop.permute.xlu1 %1048  ;;  %v1044_v39 = vpop.permute.xlu0 %1043 }
 0x125   :  { %v1007_v23 = vpack.c.bf16 %v998_v17, %v997_v15  ;;  %1541 = vmatmul.mubr.bf16.vlgmr.msra.gmra.mxu1 %v1660_v10  ;;  %1588 = vmatprep.subr.bf16.mxu1 %v1008_v16 }
 0x126   :  { %1589 = vmatpush3.bf16.msra.mxu1 %v1008_v16  ;;  %1544 = vmatprep.mubr.bf16.mxu1 %v1661_v12 }
 0x127   :  { %1590 = vmatprep.subr.bf16.mxu1 %v1007_v23  ;;  %v1054_v5 = vpop.permute.xlu1 %1053  ;;  %v436_v6 = vpop.permute.xlu0 %435 }
 0x12a   :  { %1591 = vmatpush3.bf16.msra.mxu1 %v1007_v23 }
 0x12b   :  { %1592 = vmatprep.subr.bf16.mxu1 %v1006_v29  ;;  %v1059_v8 = vpop.permute.xlu1 %1058  ;;  %v441_v9 = vpop.permute.xlu0 %440 }
 0x12d   :  { %1545 = vmatmul.mubr.bf16.gmra.mxu1 %v1662_v32 }
 0x12e   :  { %1593 = vmatpush3.bf16.msra.mxu1 %v1006_v29  ;;  %1548 = vmatprep.mubr.bf16.mxu1 %v1663_v35 }
 0x12f   :  { %1594 = vmatprep.subr.bf16.mxu1 %v1005_v34  ;;  %v1064_v10 = vpop.permute.xlu1 %1063  ;;  %v446_v11 = vpop.permute.xlu0 %445 }
 0x132   :  { %1595 = vmatpush3.bf16.msra.mxu1 %v1005_v34 }
 0x133   :  { %1596 = vmatprep.subr.bf16.mxu1 %v1004_v51  ;;  %v2156_v14 = vpop.permute.xlu1 %1068  ;;  %v451_v16 = vpop.permute.xlu0 %450 }
 0x135   :  { %1549 = vmatmul.mubr.bf16.gmra.mxu1 %v1664_v26 }
 0x136   :  { %1597 = vmatpush3.bf16.msra.mxu1 %v1004_v51  ;;  %1552 = vmatprep.mubr.bf16.mxu1 %v1665_v40 }
 0x137   :  { %1598 = vmatprep.subr.bf16.mxu1 %v1003_v18  ;;  %v1074_v20 = vpop.permute.xlu1 %1073  ;;  %v456_v23 = vpop.permute.xlu0 %455 }
 0x13a   :  { %1599 = vmatpush3.bf16.msra.mxu1 %v1003_v18 }
 0x13b   :  { %1600 = vmatprep.subr.bf16.mxu1 %v1002_v58  ;;  %v1079_v27 = vpop.permute.xlu1 %1078  ;;  %v461_v29 = vpop.permute.xlu0 %460 }
 0x13d   :  { %1553 = vmatmul.mubr.bf16.gmra.mxu1 %v1666_v7 }
 0x13e   :  { %1601 = vmatpush3.bf16.msra.mxu1 %v1002_v58  ;;  %1604 = vmatprep.mubr.bf16.mxu1 %v1667_v21 }
 0x13f   :  { %1602 = vmatprep.subr.bf16.mxu1 %v1001_v38  ;;  %v2162_v33 = vpop.permute.xlu1 %1083  ;;  %v466_v36 = vpop.permute.xlu0 %465 }
 0x142   :  { %1603 = vmatpush3.bf16.msra.mxu1 %v1001_v38 }
 0x143   :  { %v2170_v44 = vpop.permute.xlu1 %1088  ;;  %v2174_v45 = vpop.permute.xlu0 %470 }
 0x145   :  { %1605 = vmatmul.mubr.bf16.vlgmr.msra.gmra.mxu1 %v1668_v13 }
 0x146   :  { %1608 = vmatprep.mubr.bf16.mxu1 %v1669_v61 }
 0x147   :  { %v2180_v50 = vpop.permute.xlu1 %1093  ;;  %v2182_v51 = vpop.permute.xlu0 %475 }
 0x14b   :  { %v2184_v54 = vpop.permute.xlu1 %1098  ;;  %v2186_v56 = vpop.permute.xlu0 %480 }
 0x14d   :  { %1609 = vmatmul.mubr.bf16.gmra.mxu1 %v1670_v62 }
 0x14e   :  { %1612 = vmatprep.mubr.bf16.mxu1 %v1671_v63 }
 0x155   :  { %1613 = vmatmul.mubr.bf16.gmra.mxu1 %v1672_v0 }
 0x156   :  { %1616 = vmatprep.mubr.bf16.mxu1 %v1673_v43 }
 0x15d   :  { %1617 = vmatmul.mubr.bf16.gmra.mxu1 %v1674_v1 }
 0x1e5   :  { %v1542_v12 = vpop.f32.mrf.mxu1 }
 0x1e6   :  { %v594_v55 = vadd.f32 %v1542_v12, %v436_v6  ;;  %v486_v12 = vpop.permute.xlu0 %485 }
 0x1e7   :  { %v585_v15 = vpop.f32.mrf.mxu1 }
 0x1e8   :  { %v586_v53 = vadd.f32 %v585_v15, %v426_v3  ;;  %v650_v61 = vmax.f32 %v594_v55, 0.0  ;;  %v1104_v3 = vpop.permute.xlu1 %1103 }
 0x1e9   :  { %v1543_v17 = vpop.f32.mrf.mxu1 }
 0x1ea   :  { %v597_v59 = vadd.f32 %v1543_v17, %v441_v9  ;;  %v648_v21 = vmax.f32 %v586_v53, 0.0 }
 0x1eb   :  { %v588_v19 = vpop.f32.mrf.mxu1 }
 0x1ec   :  { %v589_v46 = vadd.f32 %v588_v19, %v431_v2  ;;  %v1109_v55 = vpop.permute.xlu1 %1108 }
 0x1ed   :  { %v1546_v22 = vpop.f32.mrf.mxu1 }
 0x1ee   :  { %v649_v60 = vmax.f32 %v589_v46, 0.0  ;;  %v610_v17 = vadd.f32 %v1546_v22, %v456_v23  ;;  %v491_v22 = vpop.permute.xlu0 %490 }
 0x1ef   :  { %v601_v24 = vpop.f32.mrf.mxu1 }
 0x1f0   :  { %v602_v62 = vadd.f32 %v601_v24, %v446_v11 }
 0x1f1   :  { %v1547_v25 = vpop.f32.mrf.mxu1 }
 0x1f2   :  { %v652_v19 = vmax.f32 %v602_v62, 0.0 }
 0x1f3   :  { %v604_v28 = vpop.f32.mrf.mxu1 }
 0x1f5   :  { %v2158_v31 = vpop.f32.mrf.mxu1 }
 0x1f7   :  { %v2160_v32 = vpop.f32.mrf.mxu1 }
 0x1f9   :  { %v2164_v35 = vpop.f32.mrf.mxu1 }
 0x1fb   :  { %v2166_v37 = vpop.f32.mrf.mxu1 }
 0x1fd   :  { %v2168_v42 = vpop.f32.mrf.mxu1 }
 0x1ff   :  { %v2172_v34 = vpop.f32.mrf.mxu1 }
 0x201   :  { %v2176_v47 = vpop.f32.mrf.mxu1 }
 0x203   :  { %v2178_v48 = vpop.f32.mrf.mxu1 }
 0x205   :  { %v1606_v49 = vpop.f32.mrf.mxu1 }
 0x206   :  { %v1212_v30 = vadd.f32 %v1606_v49, %v1054_v5  ;;  %v605_v5 = vadd.f32 %v604_v28, %v451_v16 }
 0x207   :  { %v1203_v52 = vpop.f32.mrf.mxu1 }
 0x208   :  { %v1204_v26 = vadd.f32 %v1203_v52, %v1044_v39  ;;  %v1268_v38 = vmax.f32 %v1212_v30, 0.0  ;;  %v651_v39 = vmax.f32 %v597_v59, 0.0  ;;  %v653_v53 = vmax.f32 %v605_v5, 0.0 }
 0x209   :  { %v1607_v40 = vpop.f32.mrf.mxu1 }
 0x20a   :  { %v1266_v41 = vmax.f32 %v1204_v26, 0.0  ;;  %v1215_v57 = vadd.f32 %v1607_v40, %v1059_v8  ;;  %v1284_v8 = vmul.f32 %v1268_v38, %v650_v61  ;;  %v613_v40 = vadd.f32 %v1547_v25, %v461_v29 }
 0x20b   :  { %v1206_v18 = vpop.f32.mrf.mxu1 }
 0x20c   :  { %v1207_v58 = vadd.f32 %v1206_v18, %v1049_v4  ;;  %v1282_v0 = vmul.f32 %v1266_v41, %v648_v21  ;;  %v1269_v43 = vmax.f32 %v1215_v57, 0.0  ;;  %v654_v18 = vmax.f32 %v610_v17, 0.0 }
 0x20d   :  { %v1610_v7 = vpop.f32.mrf.mxu1  ;;  %v655_v59 = vmax.f32 %v613_v40, 0.0 }
 0x20e   :  { %v1267_v13 = vmax.f32 %v1207_v58, 0.0  ;;  %v1228_v9 = vadd.f32 %v1610_v7, %v1074_v20  ;;  %v1285_v52 = vmul.f32 %v1269_v43, %v651_v39  ;;  %v618_v20 = vadd.f32 %v2160_v32, %v466_v36  ;;  %v496_v43 = vpop.permute.xlu0 %495 }
 0x20f   :  { %v1219_v63 = vpop.f32.mrf.mxu1  ;;  %v626_v32 = vadd.f32 %v2158_v31, %v2182_v51  ;;  %v634_v51 = vadd.f32 %v2172_v34, %v486_v12 }
 0x210   :  { %v1283_v1 = vmul.f32 %v1267_v13, %v649_v60  ;;  %v1220_v2 = vadd.f32 %v1219_v63, %v1064_v10  ;;  %v1272_v46 = vmax.f32 %v1228_v9, 0.0  ;;  %v656_v36 = vmax.f32 %v618_v20, 0.0  ;;  %v1114_v63 = vpop.permute.xlu1 %1113 }
 0x211   :  { %v1611_v6 = vpop.f32.mrf.mxu1  ;;  %v658_v31 = vmax.f32 %v626_v32, 0.0  ;;  %v637_v9 = vadd.f32 %v2178_v48, %v491_v22 }
 0x212   :  { %v1298_v4 = vadd.f32 %v1283_v1, %v1282_v0  ;;  %v1270_v15 = vmax.f32 %v1220_v2, 0.0  ;;  %v1231_v11 = vadd.f32 %v1611_v6, %v1079_v27  ;;  %v1288_v29 = vmul.f32 %v1272_v46, %v654_v18 }
 0x213   :  { %v1222_v49 = vpop.f32.mrf.mxu1 }
 0x214   :  { %v1299_v26 = vadd.f32 %v1298_v4, %v1284_v8  ;;  %v1223_v24 = vadd.f32 %v1222_v49, %v2156_v14  ;;  %v1286_v30 = vmul.f32 %v1270_v15, %v652_v19  ;;  %v1273_v57 = vmax.f32 %v1231_v11, 0.0  ;;  %v1119_v49 = vpop.permute.xlu1 %1118 }
 0x215   :  { %v1614_v10 = vpop.f32.mrf.mxu1  ;;  %v621_v14 = vadd.f32 %v2166_v37, %v2174_v45  ;;  %v629_v37 = vadd.f32 %v2164_v35, %v2186_v56 }
 0x216   :  { %v1300_v16 = vadd.f32 %v1299_v26, %v1285_v52  ;;  %v1271_v28 = vmax.f32 %v1223_v24, 0.0  ;;  %v1244_v21 = vadd.f32 %v1614_v10, %v2180_v50  ;;  %v1289_v13 = vmul.f32 %v1273_v57, %v655_v59  ;;  %v501_v24 = vpop.permute.xlu0 %500 }
 0x217   :  { %v1235_v41 = vpop.f32.mrf.mxu1  ;;  %v657_v45 = vmax.f32 %v621_v14, 0.0  ;;  %v642_v52 = vadd.f32 %v2168_v42, %v496_v43  ;;  %v660_v26 = vmax.f32 %v634_v51, 0.0  ;;  %v661_v10 = vmax.f32 %v637_v9, 0.0 }
 0x218   :  { %v1301_v23 = vadd.f32 %v1300_v16, %v1286_v30  ;;  %v1287_v58 = vmul.f32 %v1271_v28, %v653_v53  ;;  %v1236_v27 = vadd.f32 %v1235_v41, %v2162_v33  ;;  %v1276_v50 = vmax.f32 %v1244_v21, 0.0 }
 0x219   :  { %v1615_v25 = vpop.f32.mrf.mxu1  ;;  %v662_v28 = vmax.f32 %v642_v52, 0.0 }
 0x21a   :  { %v1302_v7 = vadd.f32 %v1301_v23, %v1287_v58  ;;  %v1274_v60 = vmax.f32 %v1236_v27, 0.0  ;;  %v1247_v62 = vadd.f32 %v1615_v25, %v2184_v54  ;;  %v1292_v35 = vmul.f32 %v1276_v50, %v658_v31  ;;  %v1321_v50 = vld [vmem:[%s2227_s11] sm:$0x1] }
 0x21b   :  { %v1238_v38 = vpop.f32.mrf.mxu1 }
 0x21c   :  { %v1303_v61 = vadd.f32 %v1302_v7, %v1288_v29  ;;  %v1239_v33 = vadd.f32 %v1238_v38, %v2170_v44  ;;  %v1290_v1 = vmul.f32 %v1274_v60, %v656_v36  ;;  %v1277_v8 = vmax.f32 %v1247_v62, 0.0 }
 0x21d   :  { %v1618_v0 = vpop.f32.mrf.mxu1  ;;  %v659_v44 = vmax.f32 %v629_v37, 0.0 }
 0x21e   :  { %v1304_v2 = vadd.f32 %v1303_v61, %v1289_v13  ;;  %v1275_v39 = vmax.f32 %v1239_v33, 0.0  ;;  %v1260_v17 = vadd.f32 %v1618_v0, %v1114_v63  ;;  %v1320_v13 = vld [vmem:[%s2226_s10] sm:$0x1]  ;;  %s1712_s10 = smov [#allocation2]  }
 0x21f   :  { %v1251_v5 = vpop.f32.mrf.mxu1  ;;  %v1293_v34 = vmul.f32 %v1277_v8, %v659_v44  ;;  %s1359_s25 = sshll.u32 %s1712_s10, 4  ;;  %s1360_s25 = int_to_ptr.vmem [resolvable:$true] %s1359_s25 }
 0x220   :  { %v1305_v6 = vadd.f32 %v1304_v2, %v1290_v1  ;;  %v1291_v54 = vmul.f32 %v1275_v39, %v657_v45  ;;  %v1252_v4 = vadd.f32 %v1251_v5, %v1104_v3  ;;  %v645_v3 = vadd.f32 %v2176_v47, %v501_v24  ;;  %s1679_s0 = scalar_lea.vmem %s1360_s25, 16  ;;  %s1683_s26 = scalar_lea.vmem %s1360_s25, 32 }
 0x221   :  { %v1619_v15 = vpop.f32.mrf.mxu1  ;;  %v1280_v46 = vmax.f32 %v1260_v17, 0.0  ;;  %p1680_p0 = scmp.ne.s32.totalorder %s1360_s25, %s1679_s0  ;;  %p1684_p1 = scmp.lt.s32.totalorder %s1360_s25, %s1360_s25 }
 0x222   :  { %v1306_v56 = vadd.f32 %v1305_v6, %v1291_v54  ;;  %v1278_v19 = vmax.f32 %v1252_v4, 0.0  ;;  %v1263_v40 = vadd.f32 %v1619_v15, %v1119_v49  ;;  %v663_v22 = vmax.f32 %v645_v3, 0.0  ;;  %p1685_p2 = scmp.lt.s32.totalorder %s1683_s26, %s1679_s0 }
 0x223   :  { %v1254_v11 = vpop.f32.mrf.mxu1  ;;  %v1296_v42 = vmul.f32 %v1280_v46, %v662_v28 }
 0x224   :  { %v1307_v12 = vadd.f32 %v1306_v56, %v1292_v35  ;;  %v1255_v53 = vadd.f32 %v1254_v11, %v1109_v55  ;;  %v1294_v48 = vmul.f32 %v1278_v19, %v660_v26  ;;  %v1281_v20 = vmax.f32 %v1263_v40, 0.0  ;;  %p1686_p3 = por %p1685_p2, %p1684_p1 }
 0x226   :  { %v1308_v30 = vadd.f32 %v1307_v12, %v1293_v34  ;;  %v1279_v16 = vmax.f32 %v1255_v53, 0.0  ;;  %v1297_v57 = vmul.f32 %v1281_v20, %v663_v22  ;;  %p1687_p4 = pnand %p1686_p3, %p1680_p0 }
 0x228   :  { %v1309_v18 = vadd.f32 %v1308_v30, %v1294_v48  ;;  %v1295_v41 = vmul.f32 %v1279_v16, %v661_v10 }
 0x22a   :  { %v1310_v23 = vadd.f32 %v1309_v18, %v1295_v41 }
 0x22c   :  { %v1311_v58 = vadd.f32 %v1310_v23, %v1296_v42 }
 0x22e   :  { %v1312_v27 = vadd.f32 %v1311_v58, %v1297_v57 }
 0x230   :  { %v1313_v59 = vrot.slane %v1312_v27, 4 }
 0x232   :  { %v1314_v14 = vadd.f32 %v1313_v59, %v1312_v27 }
 0x234   :  { %v1315_v55 = vrot.slane %v1314_v14, 2 }
 0x236   :  { %v1316_v25 = vadd.f32 %v1315_v55, %v1314_v14 }
 0x238   :  { %v1317_v47 = vrot.slane %v1316_v25, 1 }
 0x23a   :  { %v1318_v29 = vadd.f32 %v1317_v47, %v1316_v25 }
 0x23c   :  { %v1325_v7 = vand.u32 2147483647, %v1318_v29  ;;  %1319 = vst [vmem:[#allocation2] sm:$0x1] %v1318_v29  ;;  %v1322_v62 = vmax.f32 %v1318_v29, 0.0  ;;  %v1323_v33 = vmul.f32 %v1320_v13, %v1318_v29 }
 0x23e   :  { %v1326_v21 = vsub.f32 0.0, %v1325_v7  ;;  %v1324_v43 = vsub.f32 %v1322_v62, %v1323_v33 }
 0x240   :  { %v1327_v60 = vmul.f32 1.442695, %v1326_v21 }
 0x242   :  { %1675 = vpow2.f32 %v1327_v60 }
 0x24f   :  { %v1676_v32 = vpop.eup %1675 }
 0x250   :  { %v1329_v36 = vadd.f32 1.0, %v1676_v32  ;;  %v1332_v38 = vmul.f32 -0.5, %v1676_v32  ;;  %v1335_v63 = vand.u32 2147483647, %v1676_v32 }
 0x252   :  { %1677 = vlog2.f32 %v1329_v36  ;;  %v1333_v61 = vadd.f32 1.0, %v1332_v38  ;;  %vm1336_vm0 = vcmp.lt.f32.partialorder %v1335_v63, 0.0004427343 }
 0x254   :  { %v1334_v0 = vmul.f32 %v1676_v32, %v1333_v61 }
 0x25f   :  { %v1678_v37 = vpop.eup %1677 }
 0x260   :  { %v1331_v45 = vmul.f32 0.6931472, %v1678_v37 }
 0x262   :  { %v1337_v1 = vsel %vm1336_vm0, %v1334_v0, %v1331_v45 }
 0x263   :  { %v1338_v2 = vadd.f32 %v1337_v1, %v1324_v43 }
 0x265   :  { %v1339_v39 = vmul.f32 %v1338_v2, %v1321_v50 }
 0x267   :  { %v1341_v31 = vsel %vm1340_vm1, %v1339_v39, 0.0 }
 0x268   :  { %1342 = vadd.xlane.f32.xlu0 %v1341_v31 }
 0x269   :  { %1690 = shalt.err (!%p1687_p4)
}
 0x26a   :  { %1362 = dma.vmem_to_hbm [thread:$0]  %s1360_s25, 16, %s2228_s12, [#allocation3]  }
 0x26b   :  { %s1713_s1 = smov [#allocation5]  }
 0x2f1   :  { %v1343_v51 = vpop.xlane.xlu0 %1342 }
 0x2f2   :  { %v1344_v5 = vrot.slane %v1343_v51, 4 }
 0x2f4   :  { %v1345_v6 = vadd.f32 %v1344_v5, %v1343_v51 }
 0x2f6   :  { %v1346_v8 = vrot.slane %v1345_v6, 2 }
 0x2f8   :  { %v1347_v54 = vadd.f32 %v1346_v8, %v1345_v6 }
 0x2fa   :  { %v1348_v4 = vrot.slane %v1347_v54, 1 }
 0x2fc   :  { %v1349_v44 = vadd.f32 %v1348_v4, %v1347_v54 }
 0x2fe   :  { %1620 = vpush %v1349_v44 }
 0x32f   :  { %s1621_s11 = spop %1620 }
 0x330   :  { %1352 = sst [smem:[#allocation5]] %s1621_s11 }
 0x331   :  { %1370 = dma.smem_to_hbm %s1713_s1, 16, %s2229_s13, [#allocation4]  }
 0x332   :  { %1707 = dma.done.wait [#allocation3], 16  }
 0x333   :  { %1708 = vsyncadd [#allocation3], 4294967280 }
 0x334   :  { %1709 = dma.done.wait [#allocation4], 16  }
 0x335   :  { %1710 = vsyncadd [#allocation4], 4294967280 }
 0x336   :  { %1377 = sfence }
 0x337   :  { %1378 = vsyncpa [#allocation3], 1 }
 0x338   :  { %1379 = vsyncpa [#allocation4], 1 }

</bundles_post_ra>
